<compile_context>
chip_gen: v7x
topology: tpu7x:2x2x1
jax: 0.10.0
libtpu: 0.0.40
codegen_flags: <defaults>
</compile_context>

<pallas_src>
import functools

import jax
import jax.numpy as jnp
from jax.experimental import pallas as pl
from jax.experimental.pallas import tpu as pltpu

_LANE = 128


def _round_up(x, m):
    return (x + m - 1) // m * m


def _device_kind():
    try:
        return jax.devices()[0].device_kind.lower()
    except Exception:
        return ""


def _default_weight_dtype():
    """bf16 MXU operands on v6e/v7x (native bf16 MXU, halves weight VMEM/DMA);
    keep f32 on v5e / unknown chips."""
    kind = _device_kind()
    if "v6" in kind or "v7" in kind:
        return jnp.bfloat16
    return jnp.float32


def _default_vmem_limit_bytes():
    """Generation-aware VMEM limit: physical capacity minus headroom, capped
    at 100 MiB (v5e/v6e have 128 MiB physical, v7x only 64 MiB per TC)."""
    cap = None
    try:
        cap = int(pltpu.get_tpu_info().vmem_capacity_bytes)
    except Exception:
        cap = None
    if not cap:
        cap = (64 << 20) if "v7" in _device_kind() else (128 << 20)
    return int(max(32 << 20, min(cap - (16 << 20), 100 << 20)))


def _fused_mlp_kernel(*refs, num_hidden):
    # refs = [x_ref, w0, b0, w1, b1, ..., w_out, b_out, out_ref, hidden_ref]
    x_ref = refs[0]
    out_ref, hidden_ref = refs[-2], refs[-1]
    wb = refs[1:-2]

    h = x_ref[...].astype(jnp.float32)
    # Hidden layers: Linear + ReLU, fused; activations stay in vregs.
    for layer in range(num_hidden):
        w = wb[2 * layer][...]
        b = wb[2 * layer + 1][...].astype(jnp.float32)
        # MXU operands in the stored weight dtype (bf16 on v6e/v7x, f32 on
        # v5e); accumulation is always f32; bias-add/ReLU on the VPU in f32.
        h = jnp.dot(h.astype(w.dtype), w,
                    preferred_element_type=jnp.float32) + b
        h = jnp.maximum(h, 0.0)
    hidden_ref[...] = h.astype(hidden_ref.dtype)

    # Output layer (no activation).
    w_out = wb[2 * num_hidden][...]
    b_out = wb[2 * num_hidden + 1][...].astype(jnp.float32)
    y = jnp.dot(h.astype(w_out.dtype), w_out,
                preferred_element_type=jnp.float32) + b_out
    out_ref[...] = y.astype(out_ref.dtype)


def prepare_mlp_params(params, *, lane=_LANE, weight_dtype=None):
    """Pad (and optionally cast) weights/biases ONCE; reused by every forward.

    params: {"hidden": [(W, b), ...], "out": (W, b)} with W shaped (in, out).
    Hoisting the pads out of the per-call wrapper removes 2*num_layers XLA pad
    ops (full weight HBM read+write) from the hot path.
    """
    if weight_dtype is None:
        weight_dtype = _default_weight_dtype()
    all_params = list(params["hidden"]) + [params["out"]]
    num_hidden = len(params["hidden"])
    in_dim = all_params[0][0].shape[0]
    dims = [in_dim] + [w.shape[1] for (w, _) in all_params]
    dims_p = [_round_up(d, lane) for d in dims]

    wb_padded = []
    for li, (w, b) in enumerate(all_params):
        kp, np_ = dims_p[li], dims_p[li + 1]
        w_p = jnp.pad(w, ((0, kp - w.shape[0]), (0, np_ - w.shape[1])))
        b_p = jnp.pad(b.reshape(1, -1), ((0, 0), (0, np_ - b.shape[0])))
        wb_padded.append(w_p.astype(weight_dtype))
        wb_padded.append(b_p.astype(jnp.float32))

    return {
        "wb": tuple(wb_padded),
        "dims": tuple(dims),
        "dims_p": tuple(dims_p),
        "num_hidden": num_hidden,
    }


def fused_mlp_pallas(prepared, x):
    """Fully fused MLP forward. Returns (out, hidden), matching SimpleMLP."""
    dims, dims_p = prepared["dims"], prepared["dims_p"]
    num_hidden = prepared["num_hidden"]
    num_layers = num_hidden + 1
    wb = prepared["wb"]

    M, in_dim = x.shape
    assert in_dim == dims[0]

    # --- Batch tiling --------------------------------------------------------
    #  * tiny  (<=128 rows): one grid step, zero per-step overhead
    #  * mid   (<=2048)    : two tiles -> both TensorCores on v7x ("parallel")
    #  * large             : 1024-row tiles (512 KiB f32 tile at 128 lanes;
    #                        ~85%+ of HBM roofline vs ~63% at 256-row tiles)
    m_pad = _round_up(M, 8)
    if m_pad <= 128:
        block_m = m_pad
    elif m_pad <= 2048:
        block_m = _round_up(-(-m_pad // 2), 8)
    else:
        block_m = 1024
    m_pad = _round_up(m_pad, block_m)
    grid = (m_pad // block_m,)

    # Per-call padding only for x (weights were padded once in prepare).
    x_p = jnp.pad(x, ((0, m_pad - M), (0, dims_p[0] - in_dim)))

    # --- BlockSpecs ----------------------------------------------------------
    # x / out / hidden tiled over batch (default double-buffering). Weights and
    # biases are grid-invariant -> Buffered(1): no wasted second VMEM buffer.
    resident = pl.Buffered(1)
    in_specs = [pl.BlockSpec((block_m, dims_p[0]), lambda i: (i, 0))]
    for li in range(num_layers):
        in_specs.append(pl.BlockSpec((dims_p[li], dims_p[li + 1]),
                                     lambda i: (0, 0), pipeline_mode=resident))
        in_specs.append(pl.BlockSpec((1, dims_p[li + 1]),
                                     lambda i: (0, 0), pipeline_mode=resident))
    out_specs = [
        pl.BlockSpec((block_m, dims_p[-1]), lambda i: (i, 0)),          # out
        pl.BlockSpec((block_m, dims_p[num_hidden]), lambda i: (i, 0)),  # hidden
    ]
    out_shape = [
        jax.ShapeDtypeStruct((m_pad, dims_p[-1]), x.dtype),
        jax.ShapeDtypeStruct((m_pad, dims_p[num_hidden]), x.dtype),
    ]

    # Advisory cost estimate so XLA schedules surrounding pad/slice ops around
    # (not serialized with) this short kernel.
    flops = 2 * m_pad * sum(dims_p[i] * dims_p[i + 1] for i in range(num_layers))
    bytes_accessed = (
        x_p.size * x_p.dtype.itemsize
        + sum(int(a.size) * a.dtype.itemsize for a in wb)
        + m_pad * (dims_p[-1] + dims_p[num_hidden]) * x.dtype.itemsize)
    cost = pl.CostEstimate(flops=int(flops), transcendentals=0,
                           bytes_accessed=int(bytes_accessed))

    kernel = functools.partial(_fused_mlp_kernel, num_hidden=num_hidden)
    out_p, hidden_p = pl.pallas_call(
        kernel,
        out_shape=out_shape,
        grid_spec=pltpu.PrefetchScalarGridSpec(
            num_scalar_prefetch=0,
            grid=grid,
            in_specs=in_specs,
            out_specs=out_specs,
        ),
        compiler_params=pltpu.CompilerParams(
            dimension_semantics=("parallel",),
            vmem_limit_bytes=_default_vmem_limit_bytes(),
        ),
        cost_estimate=cost,
    )(x_p, *wb)

    # TODO(synk): with output_dim << 128 these slices read back padded lanes;
    # downstream consumers could take the padded buffers directly. Under jit
    # they fuse with consumers, which is why the forward is jitted in __main__.
    out = out_p[:M, :dims[-1]]
    hidden = hidden_p[:M, :dims[num_hidden]]
    return out, hidden


def init_simple_mlp_params(key, input_dim, hidden_dim, output_dim,
                           zeroinit=False, dtype=jnp.float32):
    """Synthetic init mimicking nn.Linear's uniform(-1/sqrt(in), 1/sqrt(in)).

    Matches the PyTorch module: zeroinit zeros only the hidden weights, biases
    stay randomly initialized.
    """
    dims = [input_dim] + list(hidden_dim)
    params = {"hidden": [], "out": None}
    for i in range(len(hidden_dim)):
        key, kw, kb = jax.random.split(key, 3)
        fan_in = dims[i]
        bound = 1.0 / jnp.sqrt(fan_in)
        w = jnp.zeros((dims[i], dims[i + 1]), dtype) if zeroinit else \
            jax.random.uniform(kw, (dims[i], dims[i + 1]), dtype, -bound, bound)
        bb = jax.random.uniform(kb, (dims[i + 1],), dtype, -bound, bound)
        params["hidden"].append((w, bb))
    key, kw, kb = jax.random.split(key, 3)
    fan_in = hidden_dim[-1]
    bound = 1.0 / jnp.sqrt(fan_in)
    w_out = jax.random.uniform(kw, (hidden_dim[-1], output_dim), dtype, -bound, bound)
    b_out = jax.random.uniform(kb, (output_dim,), dtype, -bound, bound)
    params["out"] = (w_out, b_out)
    return params


def simple_mlp_forward(prepared, x):
    """Matches SimpleMLP.forward: returns (output, hidden). Dropout=0 -> Identity."""
    return fused_mlp_pallas(prepared, x)


if __name__ == "__main__":
    key = jax.random.PRNGKey(0)
    batch = 16
    input_dim = 32
    hidden_dim = [64, 32]
    output_dim = 8

    kx, kp = jax.random.split(key)
    x = jax.random.normal(kx, (batch, input_dim), jnp.float32)
    params = init_simple_mlp_params(kp, input_dim, hidden_dim, output_dim,
                                    zeroinit=False)

    # Pad / cast the weights ONCE (hoisted out of the per-forward hot path).
    prepared = prepare_mlp_params(params)

    # jit the wrapper so the x-pad and output slices fuse around the kernel.
    fwd = jax.jit(functools.partial(simple_mlp_forward, prepared))
    out, hidden = fwd(x)
    jax.block_until_ready((out, hidden))

    # Pure-JAX f32 reference (same params, same math).
    h_ref = x
    for (w, b) in params["hidden"]:
        h_ref = jnp.maximum(h_ref @ w + b, 0.0)
    out_ref = h_ref @ params["out"][0] + params["out"][1]

    assert out.shape == (batch, output_dim)
    assert hidden.shape == (batch, hidden_dim[-1])
    # bf16 MXU operands (default on v6e/v7x) need a looser tolerance than f32.
    weights_f32 = prepared["wb"][0].dtype == jnp.float32
    tol = 1e-5 if weights_f32 else 3e-2
    assert jnp.allclose(out, out_ref, atol=tol, rtol=tol), \
        float(jnp.max(jnp.abs(out - out_ref)))
    assert jnp.allclose(hidden, h_ref, atol=tol, rtol=tol), \
        float(jnp.max(jnp.abs(hidden - h_ref)))

    print("KERNEL_OK")
</pallas_src>

<mosaic_0001>
module attributes {stable_mosaic.version = 11 : i64} {
  func.func @_fused_mlp_kernel(%arg0: i32, %arg1: memref<16x128xf32, #tpu.memory_space<vmem>>, %arg2: memref<128x128xf32, #tpu.memory_space<vmem>>, %arg3: memref<1x128xf32, #tpu.memory_space<vmem>>, %arg4: memref<128x128xf32, #tpu.memory_space<vmem>>, %arg5: memref<1x128xf32, #tpu.memory_space<vmem>>, %arg6: memref<128x128xf32, #tpu.memory_space<vmem>>, %arg7: memref<1x128xf32, #tpu.memory_space<vmem>>, %arg8: memref<16x128xf32, #tpu.memory_space<vmem>>, %arg9: memref<16x128xf32, #tpu.memory_space<vmem>>) attributes {dimension_semantics = [#tpu.dimension_semantics<parallel>], iteration_bounds = array<i64: 1>, scalar_prefetch = 0 : i64, scratch_operands = 0 : i64, tpu.core_type = #tpu.core_type<tc>, window_params = [{transform_indices = @transform_0, window_bounds = array<i64: 16, 128>}, {pipeline_mode = #tpu.pipeline_mode<synchronous>, transform_indices = @transform_1, window_bounds = array<i64: 128, 128>}, {pipeline_mode = #tpu.pipeline_mode<synchronous>, transform_indices = @transform_2, window_bounds = array<i64: 1, 128>}, {pipeline_mode = #tpu.pipeline_mode<synchronous>, transform_indices = @transform_3, window_bounds = array<i64: 128, 128>}, {pipeline_mode = #tpu.pipeline_mode<synchronous>, transform_indices = @transform_4, window_bounds = array<i64: 1, 128>}, {pipeline_mode = #tpu.pipeline_mode<synchronous>, transform_indices = @transform_5, window_bounds = array<i64: 128, 128>}, {pipeline_mode = #tpu.pipeline_mode<synchronous>, transform_indices = @transform_6, window_bounds = array<i64: 1, 128>}, {transform_indices = @transform_7, window_bounds = array<i64: 16, 128>}, {transform_indices = @transform_8, window_bounds = array<i64: 16, 128>}]} {
    %c0 = arith.constant 0 : index
    %c0_0 = arith.constant 0 : index
    %0 = vector.load %arg1[%c0, %c0_0] : memref<16x128xf32, #tpu.memory_space<vmem>>, vector<16x128xf32>
    %c0_1 = arith.constant 0 : index
    %c0_2 = arith.constant 0 : index
    %1 = vector.load %arg2[%c0_1, %c0_2] : memref<128x128xf32, #tpu.memory_space<vmem>>, vector<128x128xf32>
    %c0_3 = arith.constant 0 : index
    %c0_4 = arith.constant 0 : index
    %2 = vector.load %arg3[%c0_3, %c0_4] : memref<1x128xf32, #tpu.memory_space<vmem>>, vector<1x128xf32>
    %cst = arith.constant dense<0.000000e+00> : vector<16x128xf32>
    %3 = tpu.matmul %0, %1, %cst {dimension_numbers = #tpu.dot_dimension_numbers<[1], [0], [0], [1], [0, 0, 1, 1], [], []>} : vector<16x128xf32>, vector<128x128xf32>, vector<16x128xf32> -> vector<16x128xf32>
    %4 = vector.broadcast %2 : vector<1x128xf32> to vector<16x128xf32>
    %5 = arith.addf %3, %4 : vector<16x128xf32>
    %cst_5 = arith.constant 0.000000e+00 : f32
    %6 = vector.broadcast %cst_5 : f32 to vector<16x128xf32>
    %7 = arith.maximumf %5, %6 : vector<16x128xf32>
    %c0_6 = arith.constant 0 : index
    %c0_7 = arith.constant 0 : index
    %8 = vector.load %arg4[%c0_6, %c0_7] : memref<128x128xf32, #tpu.memory_space<vmem>>, vector<128x128xf32>
    %c0_8 = arith.constant 0 : index
    %c0_9 = arith.constant 0 : index
    %9 = vector.load %arg5[%c0_8, %c0_9] : memref<1x128xf32, #tpu.memory_space<vmem>>, vector<1x128xf32>
    %cst_10 = arith.constant dense<0.000000e+00> : vector<16x128xf32>
    %10 = tpu.matmul %7, %8, %cst_10 {dimension_numbers = #tpu.dot_dimension_numbers<[1], [0], [0], [1], [0, 0, 1, 1], [], []>} : vector<16x128xf32>, vector<128x128xf32>, vector<16x128xf32> -> vector<16x128xf32>
    %11 = vector.broadcast %9 : vector<1x128xf32> to vector<16x128xf32>
    %12 = arith.addf %10, %11 : vector<16x128xf32>
    %cst_11 = arith.constant 0.000000e+00 : f32
    %13 = vector.broadcast %cst_11 : f32 to vector<16x128xf32>
    %14 = arith.maximumf %12, %13 : vector<16x128xf32>
    %c0_12 = arith.constant 0 : index
    %c0_13 = arith.constant 0 : index
    %15 = vector.load %arg9[%c0_12, %c0_13] : memref<16x128xf32, #tpu.memory_space<vmem>>, vector<16x128xf32>
    tpu.vector_store %arg9[%c0_12, %c0_13], %14 {strides = array<i32>} : memref<16x128xf32, #tpu.memory_space<vmem>>, vector<16x128xf32>,
    %c0_14 = arith.constant 0 : index
    %c0_15 = arith.constant 0 : index
    %16 = vector.load %arg6[%c0_14, %c0_15] : memref<128x128xf32, #tpu.memory_space<vmem>>, vector<128x128xf32>
    %c0_16 = arith.constant 0 : index
    %c0_17 = arith.constant 0 : index
    %17 = vector.load %arg7[%c0_16, %c0_17] : memref<1x128xf32, #tpu.memory_space<vmem>>, vector<1x128xf32>
    %cst_18 = arith.constant dense<0.000000e+00> : vector<16x128xf32>
    %18 = tpu.matmul %14, %16, %cst_18 {dimension_numbers = #tpu.dot_dimension_numbers<[1], [0], [0], [1], [0, 0, 1, 1], [], []>} : vector<16x128xf32>, vector<128x128xf32>, vector<16x128xf32> -> vector<16x128xf32>
    %19 = vector.broadcast %17 : vector<1x128xf32> to vector<16x128xf32>
    %20 = arith.addf %18, %19 : vector<16x128xf32>
    %c0_19 = arith.constant 0 : index
    %c0_20 = arith.constant 0 : index
    %21 = vector.load %arg8[%c0_19, %c0_20] : memref<16x128xf32, #tpu.memory_space<vmem>>, vector<16x128xf32>
    tpu.vector_store %arg8[%c0_19, %c0_20], %20 {strides = array<i32>} : memref<16x128xf32, #tpu.memory_space<vmem>>, vector<16x128xf32>,
    return
  }
  func.func @transform_0(%arg0: i32) -> (i32, i32) {
    %c0_i32 = arith.constant 0 : i32
    %c0_i32_0 = arith.constant 0 : i32
    return %arg0, %c0_i32 : i32, i32
  }
  func.func @transform_1(%arg0: i32) -> (i32, i32) {
    %c0_i32 = arith.constant 0 : i32
    %c0_i32_0 = arith.constant 0 : i32
    %c0_i32_1 = arith.constant 0 : i32
    return %c0_i32, %c0_i32_0 : i32, i32
  }
  func.func @transform_2(%arg0: i32) -> (i32, i32) {
    %c0_i32 = arith.constant 0 : i32
    %c0_i32_0 = arith.constant 0 : i32
    %c0_i32_1 = arith.constant 0 : i32
    return %c0_i32, %c0_i32_0 : i32, i32
  }
  func.func @transform_3(%arg0: i32) -> (i32, i32) {
    %c0_i32 = arith.constant 0 : i32
    %c0_i32_0 = arith.constant 0 : i32
    %c0_i32_1 = arith.constant 0 : i32
    return %c0_i32, %c0_i32_0 : i32, i32
  }
  func.func @transform_4(%arg0: i32) -> (i32, i32) {
    %c0_i32 = arith.constant 0 : i32
    %c0_i32_0 = arith.constant 0 : i32
    %c0_i32_1 = arith.constant 0 : i32
    return %c0_i32, %c0_i32_0 : i32, i32
  }
  func.func @transform_5(%arg0: i32) -> (i32, i32) {
    %c0_i32 = arith.constant 0 : i32
    %c0_i32_0 = arith.constant 0 : i32
    %c0_i32_1 = arith.constant 0 : i32
    return %c0_i32, %c0_i32_0 : i32, i32
  }
  func.func @transform_6(%arg0: i32) -> (i32, i32) {
    %c0_i32 = arith.constant 0 : i32
    %c0_i32_0 = arith.constant 0 : i32
    %c0_i32_1 = arith.constant 0 : i32
    return %c0_i32, %c0_i32_0 : i32, i32
  }
  func.func @transform_7(%arg0: i32) -> (i32, i32) {
    %c0_i32 = arith.constant 0 : i32
    %c0_i32_0 = arith.constant 0 : i32
    return %arg0, %c0_i32 : i32, i32
  }
  func.func @transform_8(%arg0: i32) -> (i32, i32) {
    %c0_i32 = arith.constant 0 : i32
    %c0_i32_0 = arith.constant 0 : i32
    return %arg0, %c0_i32 : i32, i32
  }
}

</mosaic_0001>

<bundles_post_ra>
// kernel: simple_mlp_forward.1
= control target key start
LH: loop header
LB: loop body
LE: loop exit
PB: predicated region body
PF: predicated region fallthrough
CT: control target
= control target key end

     0   :  { %14 = vsyncpa [#allocation3], 0  ;;  %s1134_s0 = inlined_call_operand.hbm [shape: f32[16,128], index: 0, kind: input, shape index: {}]   ;;  %s1135_s1 = inlined_call_operand.hbm [shape: f32[128,128], index: 1, kind: input, shape index: {}]   ;;  %s1136_s2 = inlined_call_operand.hbm [shape: f32[1,128], index: 2, kind: input, shape index: {}]   ;;  %s1137_s3 = inlined_call_operand.hbm [shape: f32[128,128], index: 3, kind: input, shape index: {}]   ;;  %s1138_s4 = inlined_call_operand.hbm [shape: f32[1,128], index: 4, kind: input, shape index: {}]   ;;  %s1139_s5 = inlined_call_operand.hbm [shape: f32[128,128], index: 5, kind: input, shape index: {}]   ;;  %s1140_s6 = inlined_call_operand.hbm [shape: f32[1,128], index: 6, kind: input, shape index: {}]   ;;  %s1141_s7 = inlined_call_operand.hbm [shape: f32[16,128], index: 7, kind: output, shape index: {0}]   ;;  %s1142_s8 = inlined_call_operand.hbm [shape: f32[16,128], index: 8, kind: output, shape index: {1}]  }
   0x1   :  { %15 = vsyncpa [#allocation6], 0 }
   0x2   :  { %16 = vsyncpa [#allocation9], 0 }
   0x3   :  { %17 = vsyncpa [#allocation12], 0 }
   0x4   :  { %18 = vsyncpa [#allocation4], 0 }
   0x5   :  { %19 = vsyncpa [#allocation16], 0  ;;  %s938_s27 = smov [#allocation5]   ;;  %s939_s29 = smov [#allocation8]  }
   0x6   :  { %s37_s28 = sshll.u32 %s938_s27, 4  ;;  %s59_s30 = sshll.u32 %s939_s29, 4  ;;  %s38_s28 = int_to_ptr.vmem [resolvable:$true] %s37_s28  ;;  %s994_s30 = int_to_ptr.vmem [resolvable:$true] %s59_s30 }
   0x7   :  { %s728_s11 = scalar_lea.hbm %s1135_s1, 2048 }
   0x8   :  { %p729_p0 = scmp.ne.s32.totalorder %s1135_s1, %s728_s11  ;;  %p732_p1 = scmp.lt.u32.totalorder %s728_s11, %s1135_s1 }
   0xa   :  { %p734_p2 = pnand %p732_p1, %p729_p0 }
   0xc   :  { %737 = shalt.err (!%p734_p2)
}
   0xd   :  { %s738_s16 = scalar_lea.vmem %s38_s28, 2048  ;;  %p743_p4 = scmp.lt.s32.totalorder %s38_s28, %s38_s28 }
   0xe   :  { %p739_p3 = scmp.ne.s32.totalorder %s38_s28, %s738_s16  ;;  %p744_p5 = scmp.lt.s32.totalorder %s738_s16, %s738_s16 }
  0x10   :  { %p745_p6 = por %p744_p5, %p743_p4 }
  0x12   :  { %p746_p7 = pnand %p745_p6, %p739_p3 }
  0x14   :  { %749 = shalt.err (!%p746_p7)
}
  0x15   :  { %s940_s17 = smov 128   ;;  %s941_s18 = smov 8  }
  0x16   :  { %43 = dma.hbm_to_vmem [thread:$0]  %s1135_s1, 2048, %s38_s28, [#allocation6], %s940_s17, %s940_s17, %s941_s18  }
  0x17   :  { %s750_s23 = scalar_lea.hbm %s1137_s3, 2048 }
  0x18   :  { %p751_p8 = scmp.ne.s32.totalorder %s1137_s3, %s750_s23  ;;  %p754_p9 = scmp.lt.u32.totalorder %s750_s23, %s1137_s3 }
  0x1a   :  { %p756_p10 = pnand %p754_p9, %p751_p8 }
  0x1c   :  { %759 = shalt.err (!%p756_p10)
}
  0x1d   :  { %s760_s29 = scalar_lea.vmem %s994_s30, 2048  ;;  %p765_p12 = scmp.lt.s32.totalorder %s994_s30, %s994_s30 }
  0x1e   :  { %p761_p11 = scmp.ne.s32.totalorder %s994_s30, %s760_s29  ;;  %p766_p13 = scmp.lt.s32.totalorder %s760_s29, %s760_s29 }
  0x20   :  { %p767_p0 = por %p766_p13, %p765_p12 }
  0x22   :  { %p768_p1 = pnand %p767_p0, %p761_p11 }
  0x24   :  { %771 = shalt.err (!%p768_p1)
}
  0x25   :  { %65 = dma.hbm_to_vmem [thread:$0]  %s1137_s3, 2048, %s994_s30, [#allocation9], %s940_s17, %s940_s17, %s941_s18  }
  0x26   :  { %s942_s9 = smov [#allocation11]   ;;  %s943_s11 = smov [#allocation2]  }
  0x27   :  { %s81_s10 = sshll.u32 %s942_s9, 4  ;;  %s25_s12 = sshll.u32 %s943_s11, 4  ;;  %s82_s10 = int_to_ptr.vmem [resolvable:$true] %s81_s10  ;;  %s1031_s12 = int_to_ptr.vmem [resolvable:$true] %s25_s12 }
  0x28   :  { %s772_s15 = scalar_lea.hbm %s1139_s5, 2048 }
  0x29   :  { %p773_p2 = scmp.ne.s32.totalorder %s1139_s5, %s772_s15  ;;  %p776_p3 = scmp.lt.u32.totalorder %s772_s15, %s1139_s5 }
  0x2b   :  { %p778_p4 = pnand %p776_p3, %p773_p2 }
  0x2d   :  { %781 = shalt.err (!%p778_p4)
}
  0x2e   :  { %s782_s3 = scalar_lea.vmem %s82_s10, 2048  ;;  %p787_p6 = scmp.lt.s32.totalorder %s82_s10, %s82_s10 }
  0x2f   :  { %p783_p5 = scmp.ne.s32.totalorder %s82_s10, %s782_s3  ;;  %p788_p7 = scmp.lt.s32.totalorder %s782_s3, %s782_s3 }
  0x31   :  { %p789_p8 = por %p788_p7, %p787_p6 }
  0x33   :  { %p790_p9 = pnand %p789_p8, %p783_p5 }
  0x35   :  { %793 = shalt.err (!%p790_p9)
}
  0x36   :  { %87 = dma.hbm_to_vmem [thread:$0]  %s1139_s5, 2048, %s82_s10, [#allocation12], %s940_s17, %s940_s17, %s941_s18  }
  0x37   :  { %s794_s25 = scalar_lea.hbm %s1134_s0, 256 }
  0x38   :  { %p795_p10 = scmp.ne.s32.totalorder %s1134_s0, %s794_s25  ;;  %p798_p11 = scmp.lt.u32.totalorder %s794_s25, %s1134_s0 }
  0x3a   :  { %p800_p12 = pnand %p798_p11, %p795_p10 }
  0x3c   :  { %803 = shalt.err (!%p800_p12)
}
  0x3d   :  { %s804_s28 = scalar_lea.vmem %s1031_s12, 256  ;;  %p809_p0 = scmp.lt.s32.totalorder %s1031_s12, %s1031_s12 }
  0x3e   :  { %p805_p13 = scmp.ne.s32.totalorder %s1031_s12, %s804_s28  ;;  %p810_p1 = scmp.lt.s32.totalorder %s804_s28, %s804_s28 }
  0x40   :  { %p811_p2 = por %p810_p1, %p809_p0 }
  0x42   :  { %p812_p3 = pnand %p811_p2, %p805_p13 }
  0x44   :  { %815 = shalt.err (!%p812_p3)
}
  0x45   :  { %31 = dma.hbm_to_vmem [thread:$0]  %s1134_s0, 256, %s1031_s12, [#allocation3], %s940_s17, %s940_s17, %s941_s18  }
  0x46   :  { %s944_s10 = smov [#allocation7]   ;;  %s945_s13 = smov [#allocation10]  }
  0x47   :  { %s50_s11 = sshll.u32 %s944_s10, 4  ;;  %s72_s14 = sshll.u32 %s945_s13, 4  ;;  %s51_s11 = int_to_ptr.vmem [resolvable:$true] %s50_s11  ;;  %s73_s14 = int_to_ptr.vmem [resolvable:$true] %s72_s14 }
  0x48   :  { %s816_s19 = scalar_lea.hbm %s1136_s2, 16 }
  0x49   :  { %p817_p4 = scmp.ne.s32.totalorder %s1136_s2, %s816_s19  ;;  %p820_p5 = scmp.lt.u32.totalorder %s816_s19, %s1136_s2 }
  0x4b   :  { %p822_p6 = pnand %p820_p5, %p817_p4 }
  0x4d   :  { %825 = shalt.err (!%p822_p6)
}
  0x4e   :  { %s826_s0 = scalar_lea.vmem %s51_s11, 16  ;;  %s830_s12 = scalar_lea.vmem %s51_s11, 32 }
  0x4f   :  { %p827_p7 = scmp.ne.s32.totalorder %s51_s11, %s826_s0  ;;  %p831_p8 = scmp.lt.s32.totalorder %s51_s11, %s51_s11 }
  0x50   :  { %p832_p9 = scmp.lt.s32.totalorder %s830_s12, %s826_s0 }
  0x52   :  { %p833_p10 = por %p832_p9, %p831_p8 }
  0x54   :  { %p834_p11 = pnand %p833_p10, %p827_p7 }
  0x56   :  { %837 = shalt.err (!%p834_p11)
}
  0x57   :  { %53 = dma.hbm_to_vmem [thread:$0]  %s1136_s2, 16, %s51_s11, [#allocation6]  }
  0x58   :  { %s838_s26 = scalar_lea.hbm %s1138_s4, 16 }
  0x59   :  { %p839_p12 = scmp.ne.s32.totalorder %s1138_s4, %s838_s26  ;;  %p842_p13 = scmp.lt.u32.totalorder %s838_s26, %s1138_s4 }
  0x5b   :  { %p844_p0 = pnand %p842_p13, %p839_p12 }
  0x5d   :  { %847 = shalt.err (!%p844_p0)
}
  0x5e   :  { %s848_s5 = scalar_lea.vmem %s73_s14, 16  ;;  %s852_s9 = scalar_lea.vmem %s73_s14, 32 }
  0x5f   :  { %p849_p1 = scmp.ne.s32.totalorder %s73_s14, %s848_s5  ;;  %p853_p2 = scmp.lt.s32.totalorder %s73_s14, %s73_s14 }
  0x60   :  { %p854_p3 = scmp.lt.s32.totalorder %s852_s9, %s848_s5 }
  0x62   :  { %p855_p4 = por %p854_p3, %p853_p2 }
  0x64   :  { %p856_p5 = pnand %p855_p4, %p849_p1 }
  0x66   :  { %859 = shalt.err (!%p856_p5)
}
  0x67   :  { %75 = dma.hbm_to_vmem [thread:$0]  %s1138_s4, 16, %s73_s14, [#allocation9]  }
  0x68   :  { %s946_s11 = smov [#allocation13]   ;;  %s860_s19 = scalar_lea.hbm %s1140_s6, 16 }
  0x69   :  { %s94_s13 = sshll.u32 %s946_s11, 4  ;;  %p861_p6 = scmp.ne.s32.totalorder %s1140_s6, %s860_s19  ;;  %s95_s13 = int_to_ptr.vmem [resolvable:$true] %s94_s13 }
  0x6a   :  { %p864_p7 = scmp.lt.u32.totalorder %s860_s19, %s1140_s6 }
  0x6c   :  { %p866_p8 = pnand %p864_p7, %p861_p6 }
  0x6e   :  { %869 = shalt.err (!%p866_p8)
}
  0x6f   :  { %s870_s0 = scalar_lea.vmem %s95_s13, 16  ;;  %s874_s4 = scalar_lea.vmem %s95_s13, 32 }
  0x70   :  { %p871_p9 = scmp.ne.s32.totalorder %s95_s13, %s870_s0  ;;  %p875_p10 = scmp.lt.s32.totalorder %s95_s13, %s95_s13 }
  0x71   :  { %p876_p11 = scmp.lt.s32.totalorder %s874_s4, %s870_s0 }
  0x73   :  { %p877_p12 = por %p876_p11, %p875_p10 }
  0x75   :  { %p878_p13 = pnand %p877_p12, %p871_p9 }
  0x77   :  { %881 = shalt.err (!%p878_p13)
}
  0x78   :  { %97 = dma.hbm_to_vmem [thread:$0]  %s1140_s6, 16, %s95_s13, [#allocation12]  }
  0x79   :  { %926 = dma.done.wait [#allocation3], 256  }
  0x7a   :  { %927 = vsyncadd [#allocation3], 4294967040 }
  0x7b   :  { %928 = dma.done.wait [#allocation6], 2064  }
  0x7c   :  { %929 = vsyncadd [#allocation6], 4294965232 }
  0x7d   :  { %930 = dma.done.wait [#allocation9], 2064  }
  0x7e   :  { %931 = vsyncadd [#allocation9], 4294965232 }
  0x7f   :  { %932 = dma.done.wait [#allocation12], 2064  }
  0x80   :  { %933 = vsyncadd [#allocation12], 4294965232  ;;  %v121_v0 = vld [vmem:[#allocation5] sm:$0xff]  ;;  %v122_v1 = vld [vmem:[#allocation5 + $0x8] sm:$0xff]  ;;  %s947_s6 = smov [#allocation15]  }
  0x81   :  { %v123_v2 = vld [vmem:[#allocation5 + $0x10] sm:$0xff]  ;;  %v621_v3 = vpack.c.bf16 %v122_v1, %v121_v0  ;;  %v124_v4 = vld [vmem:[#allocation5 + $0x18] sm:$0xff]  ;;  %v125_v6 = vld [vmem:[#allocation5 + $0x20] sm:$0xff]  ;;  %s440_s22 = sshll.u32 %s947_s6, 4  ;;  %s441_s22 = int_to_ptr.vmem [resolvable:$true] %s440_s22 }
  0x82   :  { %v625_v5 = vpack.c.bf16 %v124_v4, %v123_v2  ;;  %v126_v7 = vld [vmem:[#allocation5 + $0x28] sm:$0xff]  ;;  %v127_v9 = vld [vmem:[#allocation5 + $0x30] sm:$0xff]  ;;  %v128_v10 = vld [vmem:[#allocation5 + $0x38] sm:$0xff]  ;;  %s882_s23 = scalar_lea.vmem %s441_s22, 256  ;;  %p887_p1 = scmp.lt.s32.totalorder %s441_s22, %s441_s22 }
  0x83   :  { %622 = vmatprep.subr.bf16.mxu0 %v621_v3  ;;  %v629_v8 = vpack.c.bf16 %v126_v7, %v125_v6  ;;  %v119_v11 = vld [vmem:[#allocation2] sm:$0xff]  ;;  %v221_v12 = vld [vmem:[#allocation8] sm:$0xff]  ;;  %v224_v16 = vld [vmem:[#allocation8 + $0x18] sm:$0xff]  ;;  %v633_v20 = vpack.c.bf16 %v128_v10, %v127_v9  ;;  %p883_p0 = scmp.ne.s32.totalorder %s441_s22, %s882_s23  ;;  %p888_p2 = scmp.lt.s32.totalorder %s882_s23, %s882_s23 }
  0x84   :  { %624 = vmatpush3.bf16.msra.mxu0 %v621_v3  ;;  %548 = vmatprep.mubr.f32.mxu0 %v119_v11  ;;  %v222_v13 = vld [vmem:[#allocation8 + $0x8] sm:$0xff]  ;;  %v223_v14 = vld [vmem:[#allocation8 + $0x10] sm:$0xff]  ;;  %v225_v18 = vld [vmem:[#allocation8 + $0x20] sm:$0xff] }
  0x85   :  { %626 = vmatprep.subr.bf16.mxu0 %v625_v5  ;;  %v653_v15 = vpack.c.bf16 %v222_v13, %v221_v12  ;;  %v657_v17 = vpack.c.bf16 %v224_v16, %v223_v14  ;;  %v226_v19 = vld [vmem:[#allocation8 + $0x28] sm:$0xff]  ;;  %v129_v21 = vld [vmem:[#allocation5 + $0x40] sm:$0xff]  ;;  %v227_v24 = vld [vmem:[#allocation8 + $0x30] sm:$0xff]  ;;  %p889_p3 = por %p888_p2, %p887_p1 }
  0x86   :  { %v130_v22 = vld [vmem:[#allocation5 + $0x48] sm:$0xff]  ;;  %v661_v23 = vpack.c.bf16 %v226_v19, %v225_v18  ;;  %v228_v25 = vld [vmem:[#allocation8 + $0x38] sm:$0xff]  ;;  %v131_v27 = vld [vmem:[#allocation5 + $0x50] sm:$0xff] }
  0x87   :  { %654 = vmatprep.subr.bf16.mxu1 %v653_v15  ;;  %v637_v26 = vpack.c.bf16 %v130_v22, %v129_v21  ;;  %v132_v28 = vld [vmem:[#allocation5 + $0x58] sm:$0xff]  ;;  %v665_v29 = vpack.c.bf16 %v228_v25, %v227_v24  ;;  %v229_v30 = vld [vmem:[#allocation8 + $0x40] sm:$0xff]  ;;  %v230_v31 = vld [vmem:[#allocation8 + $0x48] sm:$0xff]  ;;  %p890_p4 = pnand %p889_p3, %p883_p0 }
  0x88   :  { %628 = vmatpush3.bf16.msra.mxu0 %v625_v5  ;;  %656 = vmatpush3.bf16.msra.mxu1 %v653_v15  ;;  %v641_v32 = vpack.c.bf16 %v132_v28, %v131_v27  ;;  %v133_v33 = vld [vmem:[#allocation5 + $0x60] sm:$0xff]  ;;  %v134_v34 = vld [vmem:[#allocation5 + $0x68] sm:$0xff]  ;;  %v669_v35 = vpack.c.bf16 %v230_v31, %v229_v30  ;;  %v231_v36 = vld [vmem:[#allocation8 + $0x50] sm:$0xff] }
  0x89   :  { %630 = vmatprep.subr.bf16.mxu0 %v629_v8  ;;  %658 = vmatprep.subr.bf16.mxu1 %v657_v17  ;;  %v232_v37 = vld [vmem:[#allocation8 + $0x58] sm:$0xff]  ;;  %v645_v38 = vpack.c.bf16 %v134_v34, %v133_v33  ;;  %v135_v39 = vld [vmem:[#allocation5 + $0x70] sm:$0xff]  ;;  %v233_v42 = vld [vmem:[#allocation8 + $0x60] sm:$0xff] }
  0x8a   :  { %v136_v40 = vld [vmem:[#allocation5 + $0x78] sm:$0xff]  ;;  %v673_v41 = vpack.c.bf16 %v232_v37, %v231_v36  ;;  %v234_v43 = vld [vmem:[#allocation8 + $0x68] sm:$0xff]  ;;  %v459_v7 = vld [vmem:[#allocation7] ss:$0 sm:$0xff] }
  0x8b   :  { %v649_v44 = vpack.c.bf16 %v136_v40, %v135_v39  ;;  %v677_v45 = vpack.c.bf16 %v234_v43, %v233_v42  ;;  %v120_v46 = vld [vmem:[#allocation2 + $0x8] sm:$0xff]  ;;  %v323_v50 = vld [vmem:[#allocation11] sm:$0xff]  ;;  %v324_v51 = vld [vmem:[#allocation11 + $0x8] sm:$0xff] }
  0x8c   :  { %632 = vmatpush3.bf16.msra.mxu0 %v629_v8  ;;  %660 = vmatpush3.bf16.msra.mxu1 %v657_v17  ;;  %v235_v47 = vld [vmem:[#allocation8 + $0x70] sm:$0xff]  ;;  %v236_v48 = vld [vmem:[#allocation8 + $0x78] sm:$0xff]  ;;  %v685_v53 = vpack.c.bf16 %v324_v51, %v323_v50  ;;  %v327_v56 = vld [vmem:[#allocation11 + $0x20] sm:$0xff] }
  0x8d   :  { %634 = vmatprep.subr.bf16.mxu0 %v633_v20  ;;  %662 = vmatprep.subr.bf16.mxu1 %v661_v23  ;;  %v681_v49 = vpack.c.bf16 %v236_v48, %v235_v47  ;;  %v325_v52 = vld [vmem:[#allocation11 + $0x10] sm:$0xff]  ;;  %v326_v54 = vld [vmem:[#allocation11 + $0x18] sm:$0xff]  ;;  %v328_v57 = vld [vmem:[#allocation11 + $0x28] sm:$0xff] }
  0x8e   :  { %v689_v55 = vpack.c.bf16 %v326_v54, %v325_v52  ;;  %v693_v58 = vpack.c.bf16 %v328_v57, %v327_v56  ;;  %v329_v59 = vld [vmem:[#allocation11 + $0x30] sm:$0xff]  ;;  %v330_v60 = vld [vmem:[#allocation11 + $0x38] sm:$0xff]  ;;  %v331_v62 = vld [vmem:[#allocation11 + $0x40] sm:$0xff] }
  0x8f   :  { %v697_v61 = vpack.c.bf16 %v330_v60, %v329_v59  ;;  %v332_v63 = vld [vmem:[#allocation11 + $0x48] sm:$0xff]  ;;  %v333_v1 = vld [vmem:[#allocation11 + $0x50] sm:$0xff]  ;;  %v334_v2 = vld [vmem:[#allocation11 + $0x58] sm:$0xff] }
  0x90   :  { %636 = vmatpush3.bf16.msra.mxu0 %v633_v20  ;;  %664 = vmatpush3.bf16.msra.mxu1 %v661_v23  ;;  %v701_v0 = vpack.c.bf16 %v332_v63, %v331_v62  ;;  %v705_v3 = vpack.c.bf16 %v334_v2, %v333_v1  ;;  %v335_v4 = vld [vmem:[#allocation11 + $0x60] sm:$0xff]  ;;  %v336_v5 = vld [vmem:[#allocation11 + $0x68] sm:$0xff]  ;;  %v337_v14 = vld [vmem:[#allocation11 + $0x70] sm:$0xff] }
  0x91   :  { %638 = vmatprep.subr.bf16.mxu0 %v637_v26  ;;  %666 = vmatprep.subr.bf16.mxu1 %v665_v29  ;;  %v709_v6 = vpack.c.bf16 %v336_v5, %v335_v4  ;;  %v338_v15 = vld [vmem:[#allocation11 + $0x78] sm:$0xff] }
  0x92   :  { %v713_v16 = vpack.c.bf16 %v338_v15, %v337_v14  ;;  %v460_v17 = vld [vmem:[#allocation10] ss:$0 sm:$0xff] }
  0x94   :  { %640 = vmatpush3.bf16.msra.mxu0 %v637_v26  ;;  %668 = vmatpush3.bf16.msra.mxu1 %v665_v29 }
  0x95   :  { %642 = vmatprep.subr.bf16.mxu0 %v641_v32  ;;  %670 = vmatprep.subr.bf16.mxu1 %v669_v35 }
  0x98   :  { %644 = vmatpush3.bf16.msra.mxu0 %v641_v32  ;;  %672 = vmatpush3.bf16.msra.mxu1 %v669_v35 }
  0x99   :  { %646 = vmatprep.subr.bf16.mxu0 %v645_v38  ;;  %674 = vmatprep.subr.bf16.mxu1 %v673_v41 }
  0x9c   :  { %648 = vmatpush3.bf16.msra.mxu0 %v645_v38  ;;  %676 = vmatpush3.bf16.msra.mxu1 %v673_v41 }
  0x9d   :  { %650 = vmatprep.subr.bf16.mxu0 %v649_v44  ;;  %678 = vmatprep.subr.bf16.mxu1 %v677_v45 }
  0xa0   :  { %652 = vmatpush3.bf16.msra.mxu0 %v649_v44  ;;  %680 = vmatpush3.bf16.msra.mxu1 %v677_v45 }
  0xa1   :  { %682 = vmatprep.subr.bf16.mxu1 %v681_v49  ;;  %686 = vmatprep.subr.bf16.mxu0 %v685_v53 }
  0xa3   :  { %549 = vmatmul.mubr.f32.vlgmr.msra.gmra.mrb[0].mxu0 %v120_v46 }
  0xa4   :  { %684 = vmatpush3.bf16.msra.mxu1 %v681_v49  ;;  %688 = vmatpush3.bf16.msra.mxu0 %v685_v53 }
  0xa5   :  { %690 = vmatprep.subr.bf16.mxu0 %v689_v55 }
  0xa8   :  { %692 = vmatpush3.bf16.msra.mxu0 %v689_v55 }
  0xa9   :  { %694 = vmatprep.subr.bf16.mxu0 %v693_v58 }
  0xac   :  { %696 = vmatpush3.bf16.msra.mxu0 %v693_v58 }
  0xad   :  { %698 = vmatprep.subr.bf16.mxu0 %v697_v61 }
  0xb0   :  { %700 = vmatpush3.bf16.msra.mxu0 %v697_v61 }
  0xb1   :  { %702 = vmatprep.subr.bf16.mxu0 %v701_v0 }
  0xb4   :  { %704 = vmatpush3.bf16.msra.mxu0 %v701_v0 }
  0xb5   :  { %706 = vmatprep.subr.bf16.mxu0 %v705_v3 }
  0xb8   :  { %708 = vmatpush3.bf16.msra.mxu0 %v705_v3 }
  0xb9   :  { %710 = vmatprep.subr.bf16.mxu0 %v709_v6 }
  0xbc   :  { %712 = vmatpush3.bf16.msra.mxu0 %v709_v6 }
  0xbd   :  { %714 = vmatprep.subr.bf16.mxu0 %v713_v16 }
  0xc0   :  { %716 = vmatpush3.bf16.msra.mxu0 %v713_v16 }
 0x176   :  { %v550_v8 = vpop.f32.mrb[0].mxu0 }
 0x177   :  { %v216_v9 = vadd.f32 %v550_v8, %v459_v7  ;;  %v210_v10 = vpop.f32.mrb[1].mxu0 }
 0x178   :  { %v211_v11 = vadd.f32 %v459_v7, %v210_v10 }
 0x179   :  { %v220_v13 = vmax.f32 %v216_v9, 0.0 }
 0x17a   :  { %v219_v12 = vmax.f32 %v211_v11, 0.0 }
 0x17c   :  { %583 = vmatprep.mubr.f32.mxu1 %v219_v12 }
 0x17d   :  { %584 = vmatmul.mubr.f32.vlgmr.msra.gmra.mrb[0].mxu1 %v220_v13 }
 0x250   :  { %v585_v18 = vpop.f32.mrb[0].mxu1 }
 0x251   :  { %v316_v19 = vadd.f32 %v585_v18, %v460_v17  ;;  %v310_v20 = vpop.f32.mrb[1].mxu1 }
 0x252   :  { %v311_v21 = vadd.f32 %v460_v17, %v310_v20 }
 0x253   :  { %v320_v22 = vmax.f32 %v316_v19, 0.0 }
 0x254   :  { %v319_v23 = vmax.f32 %v311_v21, 0.0 }
 0x255   :  { %322 = vst [vmem:[#allocation15 + $0x8] sm:$0xff] %v320_v22 }
 0x256   :  { %321 = vst [vmem:[#allocation15] sm:$0xff] %v319_v23  ;;  %618 = vmatprep.mubr.f32.mxu0 %v319_v23 }
 0x257   :  { %619 = vmatmul.mubr.f32.vlgmr.msra.gmra.mrb[2].mxu0 %v320_v22 }
 0x258   :  { %893 = shalt.err (!%p890_p4)
}
 0x259   :  { %s894_s26 = scalar_lea.hbm %s1142_s8, 256 }
 0x25a   :  { %p895_p5 = scmp.ne.s32.totalorder %s1142_s8, %s894_s26  ;;  %p898_p6 = scmp.lt.u32.totalorder %s894_s26, %s1142_s8 }
 0x25c   :  { %p900_p7 = pnand %p898_p6, %p895_p5 }
 0x25e   :  { %903 = shalt.err (!%p900_p7)
}
 0x25f   :  { %446 = dma.vmem_to_hbm [thread:$0]  %s441_s22, 256, %s1142_s8, [#allocation16], %s940_s17, %s940_s17, %s941_s18   ;;  %v461_v24 = vld [vmem:[#allocation13] ss:$0 sm:$0xff] }
 0x260   :  { %s948_s2 = smov [#allocation14]  }
 0x261   :  { %s428_s10 = sshll.u32 %s948_s2, 4  ;;  %s429_s10 = int_to_ptr.vmem [resolvable:$true] %s428_s10 }
 0x262   :  { %s904_s11 = scalar_lea.vmem %s429_s10, 256  ;;  %p909_p9 = scmp.lt.s32.totalorder %s429_s10, %s429_s10 }
 0x263   :  { %p905_p8 = scmp.ne.s32.totalorder %s429_s10, %s904_s11  ;;  %p910_p10 = scmp.lt.s32.totalorder %s904_s11, %s904_s11 }
 0x265   :  { %p911_p11 = por %p910_p10, %p909_p9 }
 0x267   :  { %p912_p12 = pnand %p911_p11, %p905_p8 }
 0x32a   :  { %v620_v25 = vpop.f32.mrb[2].mxu0 }
 0x32b   :  { %v418_v26 = vadd.f32 %v620_v25, %v461_v24  ;;  %v412_v27 = vpop.f32.mrb[3].mxu0 }
 0x32c   :  { %v413_v28 = vadd.f32 %v461_v24, %v412_v27 }
 0x32d   :  { %422 = vst [vmem:[#allocation14 + $0x8] sm:$0xff] %v418_v26 }
 0x32e   :  { %421 = vst [vmem:[#allocation14] sm:$0xff] %v413_v28 }
 0x32f   :  { %915 = shalt.err (!%p912_p12)
}
 0x330   :  { %s916_s8 = scalar_lea.hbm %s1141_s7, 256 }
 0x331   :  { %p917_p13 = scmp.ne.s32.totalorder %s1141_s7, %s916_s8  ;;  %p920_p0 = scmp.lt.u32.totalorder %s916_s8, %s1141_s7 }
 0x333   :  { %p922_p1 = pnand %p920_p0, %p917_p13 }
 0x335   :  { %925 = shalt.err (!%p922_p1)
}
 0x336   :  { %434 = dma.vmem_to_hbm [thread:$0]  %s429_s10, 256, %s1141_s7, [#allocation4], %s940_s17, %s940_s17, %s941_s18  }
 0x337   :  { %934 = dma.done.wait [#allocation4], 256  }
 0x338   :  { %935 = vsyncadd [#allocation4], 4294967040 }
 0x339   :  { %936 = dma.done.wait [#allocation16], 256  }
 0x33a   :  { %937 = vsyncadd [#allocation16], 4294967040 }
 0x33b   :  { %453 = vsyncpa [#allocation3], 1 }
 0x33c   :  { %454 = vsyncpa [#allocation6], 1 }
 0x33d   :  { %455 = vsyncpa [#allocation9], 1 }
 0x33e   :  { %456 = vsyncpa [#allocation12], 1 }
 0x33f   :  { %457 = vsyncpa [#allocation4], 1 }
 0x340   :  { %458 = vsyncpa [#allocation16], 1 }

</bundles_post_ra>
